<compile_context>
chip_gen: v6e
topology: v6e:2x2x1
jax: 0.10.0
libtpu: 0.0.40
codegen_flags: <defaults>
</compile_context>

<pallas_src>
import functools

import jax
import jax.numpy as jnp
import numpy as np
from jax.experimental import pallas as pl
from jax.experimental.pallas import tpu as pltpu


def _round_up(x, m):
    return ((x + m - 1) // m) * m


def _fast_recip(y):
    """EUP approx reciprocal + one Newton step (denominators are >= 0.01)."""
    r = pl.reciprocal(y, approx=True)
    return r * (2.0 - y * r)


def _make_is_loss_kernel(arr_h, tile_h):
    """Kernel closure over static sizes; one (batch, row-tile) grid step."""

    def kernel(i_ref, im_ref, out_ref, carry_i_ref, carry_g_ref):
        # i_ref   : (1, TH, Wb)     illumination row tile
        # im_ref  : (1, 3, TH, Wb)  RGB row tile
        # out_ref : (1, 8, Wb)      per-batch lane-dense partial sums, resident
        #                           across the row-tile grid axis
        # carry_* : (1, Wb)         previous tile's last row (cross-tile dy)
        h = pl.program_id(1)

        @pl.when(h == 0)
        def _init():
            out_ref[...] = jnp.zeros_like(out_ref)
            carry_i_ref[...] = jnp.zeros_like(carry_i_ref)
            carry_g_ref[...] = jnp.zeros_like(carry_g_ref)

        th = tile_h
        wb = i_ref.shape[2]
        row_ids = jax.lax.broadcasted_iota(jnp.int32, (th, wb), 0)
        col0 = jax.lax.broadcasted_iota(jnp.int32, (th, wb), 1) == 0
        row0 = row_ids == 0

        raw_i = i_ref[0]
        raw_g = (0.299 * im_ref[0, 0] + 0.587 * im_ref[0, 1]
                 + 0.114 * im_ref[0, 2])
        if arr_h % tile_h == 0:
            # Every row tile is fully in bounds: no masking needed.
            illum, gray = raw_i, raw_g
        else:
            # The last row tile overhangs the array; rows past the valid range
            # hold unspecified data -> zero them.  The first zeroed row also
            # reproduces the conv2d(padding=1) bottom-edge term exactly.
            valid = row_ids < (arr_h - h * th)
            illum = jnp.where(valid, raw_i, 0.0)
            gray = jnp.where(valid, raw_g, 0.0)

        k = jnp.float32(0.01)

        # ---- x direction first (shorter live ranges for big temporaries).
        def abs_dx(x):  # lane difference; column 0 is compared against the border
            return jnp.abs(x - jnp.where(col0, 0.0, pltpu.roll(x, 1, axis=1)))

        total = abs_dx(illum) * _fast_recip(jnp.maximum(abs_dx(gray), k))

        # ---- y direction (sublane difference, carry across row tiles).
        def abs_dy(x, prev_row):
            return jnp.abs(x - jnp.where(row0, prev_row,
                                         pltpu.roll(x, 1, axis=0)))

        gy_i = abs_dy(illum, carry_i_ref[...])
        gy_g = abs_dy(gray, carry_g_ref[...])
        total = total + gy_i * _fast_recip(jnp.maximum(gy_g, k))

        # Save last rows for the next row tile (carry reads above already done).
        carry_i_ref[...] = illum[th - 1:th, :]
        carry_g_ref[...] = gray[th - 1:th, :]

        # Row-group reduction (TH, Wb) -> (8, Wb): aligned static slices, pure
        # VALU adds; no per-tile cross-lane XLU reduce.  Final reduce is done
        # once in the wrapper over the (N, 8, Wb) partials.
        part = total[0:8]
        for r in range(8, th, 8):
            part = part + total[r:r + 8]
        out_ref[...] = out_ref[...] + part[jnp.newaxis]

    return kernel


def is_loss(input_I, input_im, *, max_tile_rows=512,
            input_vmem_budget_bytes=12 * 1024 * 1024,
            vmem_limit_bytes=48 * 1024 * 1024):
    """input_I: (N, 1, H, W) f32, input_im: (N, 3, H, W) f32 -> scalar f32."""
    N, CI, H, W = input_I.shape
    assert CI == 1 and input_im.shape == (N, 3, H, W)

    illum = input_I.astype(jnp.float32).reshape(N, H, W)   # metadata-only reshape
    im = input_im.astype(jnp.float32)

    # Lane alignment.  W % 128 == 0 -> NO padding pass at all; otherwise pad the
    # last dim once to a 128 multiple that includes a zero column at index W.
    w_padded = (W % 128 != 0)
    Wb = W if not w_padded else _round_up(W + 1, 128)
    Ha = max(H, 8)          # rows are never padded except the degenerate H < 8
    if w_padded or Ha != H:
        illum = jnp.pad(illum, ((0, 0), (0, Ha - H), (0, Wb - W)))
        im = jnp.pad(im, ((0, 0), (0, 0), (0, Ha - H), (0, Wb - W)))
    # TODO(synk): for W % 128 != 0 this alignment pad is still one extra HBM
    # read+write pass; a lane-tiled kernel with an in-register column carry
    # would remove it.

    # Row tile: multiple of 8, balanced across tiles (no Hp over-rounding), and
    # sized so double-buffered inputs (4 f32 channels) stay inside a v7x-safe
    # input-VMEM budget.
    rows_fit = max(8, (input_vmem_budget_bytes // (2 * 4 * 4 * Wb)) // 8 * 8)
    th_cap = max(8, min((max_tile_rows // 8) * 8, rows_fit, _round_up(Ha, 8)))
    nH = pl.cdiv(Ha, th_cap)
    TH = _round_up(pl.cdiv(Ha, nH), 8)

    # TODO(synk): for N == 1 on v7x a leading core-split of the row range
    # (grid=(2, N, nH//2), per-core carries + one seam fix-up) would use both
    # TensorCores; omitted here for simplicity.
    partial = pl.pallas_call(
        _make_is_loss_kernel(Ha, TH),
        out_shape=jax.ShapeDtypeStruct((N, 8, Wb), jnp.float32),
        grid=(N, nH),
        in_specs=[
            pl.BlockSpec((1, TH, Wb), lambda b, h: (b, h, 0)),
            pl.BlockSpec((1, 3, TH, Wb), lambda b, h: (b, 0, h, 0)),
        ],
        out_specs=pl.BlockSpec((1, 8, Wb), lambda b, h: (b, 0, 0)),
        scratch_shapes=[
            pltpu.VMEM((1, Wb), jnp.float32),   # previous illum row
            pltpu.VMEM((1, Wb), jnp.float32),   # previous gray row
        ],
        compiler_params=pltpu.CompilerParams(
            dimension_semantics=("parallel", "arbitrary"),
            vmem_limit_bytes=vmem_limit_bytes),
        cost_estimate=pl.CostEstimate(
            flops=40 * N * Ha * Wb,
            transcendentals=2 * N * Ha * Wb,
            bytes_accessed=16 * N * Ha * Wb + 4 * N * 8 * Wb),
    )(illum, im)

    total = jnp.sum(partial)

    # Boundary terms of the (H+1, W+1) gradient maps that the tiled interior
    # pass does not cover; thin slices only (negligible HBM traffic).
    rgb_w = jnp.array([0.299, 0.587, 0.114], jnp.float32)
    k = jnp.float32(0.01)
    if not w_padded:
        # Column-(W) edge: needed only when the input was NOT width-padded.
        i_col = jnp.abs(input_I[:, 0, :, W - 1].astype(jnp.float32))       # (N,H)
        g_col = jnp.abs(jnp.tensordot(
            input_im[:, :, :, W - 1].astype(jnp.float32), rgb_w,
            axes=([1], [0])))                                              # (N,H)
        total = total + jnp.sum(i_col / jnp.maximum(g_col, k))
    if Ha == H and H % TH == 0:
        # Row-(H) edge: needed only when the last row tile has no zero/masked row.
        i_row = jnp.abs(input_I[:, 0, H - 1, :].astype(jnp.float32))       # (N,W)
        g_row = jnp.abs(jnp.tensordot(
            input_im[:, :, H - 1, :].astype(jnp.float32), rgb_w,
            axes=([1], [0])))                                              # (N,W)
        total = total + jnp.sum(i_row / jnp.maximum(g_row, k))

    return total / jnp.float32(N * (H + 1) * (W + 1))


def _is_loss_ref(input_I, input_im):
    """Pure-JAX reference mirroring the PyTorch code, for verification."""
    rgb_w = jnp.array([0.299, 0.587, 0.114], jnp.float32)
    gray = jnp.tensordot(input_im, rgb_w, axes=([1], [-1]))[:, None]   # (N,1,H,W)

    def grads(x):  # x: (N,1,H,W)
        p = jnp.pad(x, ((0, 0), (0, 0), (1, 1), (1, 1)))
        gx = jnp.abs(p[:, :, 1:, 1:] - p[:, :, 1:, :-1])
        gy = jnp.abs(p[:, :, 1:, 1:] - p[:, :, :-1, 1:])
        return gx, gy

    low_gx, low_gy = grads(input_I)
    in_gx, in_gy = grads(gray)
    k = jnp.float32(0.01)
    x_loss = jnp.abs(low_gx / jnp.maximum(in_gx, k))
    y_loss = jnp.abs(low_gy / jnp.maximum(in_gy, k))
    return jnp.mean(x_loss + y_loss)


if __name__ == "__main__":
    key = jax.random.PRNGKey(0)

    def check(n, h, w, k, **kw):
        k1, k2 = jax.random.split(k)
        input_I = jax.random.uniform(k1, (n, 1, h, w), dtype=jnp.float32)
        input_im = jax.random.uniform(k2, (n, 3, h, w), dtype=jnp.float32)
        fn = jax.jit(functools.partial(is_loss, **kw))
        out = fn(input_I, input_im)
        jax.block_until_ready(out)
        ref = _is_loss_ref(input_I, input_im)
        np.testing.assert_allclose(np.asarray(out), np.asarray(ref),
                                   rtol=5e-5, atol=1e-5)

    k0, k1, k2 = jax.random.split(key, 3)
    # Main small case from the module spec (width-padded path, wrapper row edge).
    check(2, 16, 16, k0)
    # 128-aligned width -> zero-copy (no pad) path + multi-tile row carry.
    check(1, 24, 128, k1, max_tile_rows=8)
    # Ragged last row tile (in-kernel masking) with a padded width.
    check(1, 13, 20, k2, max_tile_rows=8)

    print("KERNEL_OK")
</pallas_src>

<mosaic_0001>
module attributes {stable_mosaic.version = 11 : i64} {
  func.func @kernel(%arg0: i32, %arg1: i32, %arg2: memref<1x16x128xf32, #tpu.memory_space<vmem>>, %arg3: memref<1x3x16x128xf32, #tpu.memory_space<vmem>>, %arg4: memref<1x8x128xf32, #tpu.memory_space<vmem>>, %arg5: memref<1x128xf32, #tpu.memory_space<vmem>>, %arg6: memref<1x128xf32, #tpu.memory_space<vmem>>) attributes {dimension_semantics = [#tpu.dimension_semantics<parallel>, #tpu.dimension_semantics<arbitrary>], iteration_bounds = array<i64: 2, 1>, scalar_prefetch = 0 : i64, scratch_operands = 2 : i64, tpu.core_type = #tpu.core_type<tc>, window_params = [{transform_indices = @transform_0, window_bounds = array<i64: 1, 16, 128>}, {transform_indices = @transform_1, window_bounds = array<i64: 1, 3, 16, 128>}, {transform_indices = @transform_2, window_bounds = array<i64: 1, 8, 128>}]} {
    %c0_i32 = arith.constant 0 : i32
    %0 = arith.cmpi eq, %arg1, %c0_i32 : i32
    %1 = arith.extui %0 : i1 to i32
    %c0_i32_0 = arith.constant 0 : i32
    %2 = arith.cmpi ne, %1, %c0_i32_0 : i32
    scf.if %2 {
      %cst_40 = arith.constant 0.000000e+00 : f32
      %77 = vector.broadcast %cst_40 : f32 to vector<1x8x128xf32>
      %c0_41 = arith.constant 0 : index
      %c0_42 = arith.constant 0 : index
      %c0_43 = arith.constant 0 : index
      %78 = vector.load %arg4[%c0_41, %c0_42, %c0_43] : memref<1x8x128xf32, #tpu.memory_space<vmem>>, vector<1x8x128xf32>
      tpu.vector_store %arg4[%c0_41, %c0_42, %c0_43], %77 {strides = array<i32>} : memref<1x8x128xf32, #tpu.memory_space<vmem>>, vector<1x8x128xf32>,
      %cst_44 = arith.constant 0.000000e+00 : f32
      %79 = vector.broadcast %cst_44 : f32 to vector<1x128xf32>
      %c0_45 = arith.constant 0 : index
      %c0_46 = arith.constant 0 : index
      %80 = vector.load %arg5[%c0_45, %c0_46] : memref<1x128xf32, #tpu.memory_space<vmem>>, vector<1x128xf32>
      tpu.vector_store %arg5[%c0_45, %c0_46], %79 {strides = array<i32>} : memref<1x128xf32, #tpu.memory_space<vmem>>, vector<1x128xf32>,
      %cst_47 = arith.constant 0.000000e+00 : f32
      %81 = vector.broadcast %cst_47 : f32 to vector<1x128xf32>
      %c0_48 = arith.constant 0 : index
      %c0_49 = arith.constant 0 : index
      %82 = vector.load %arg6[%c0_48, %c0_49] : memref<1x128xf32, #tpu.memory_space<vmem>>, vector<1x128xf32>
      tpu.vector_store %arg6[%c0_48, %c0_49], %81 {strides = array<i32>} : memref<1x128xf32, #tpu.memory_space<vmem>>, vector<1x128xf32>,
    } else {
    }
    %3 = tpu.iota {dimensions = array<i32: 0>} : vector<16x128xi32>
    %4 = tpu.iota {dimensions = array<i32: 1>} : vector<16x128xi32>
    %c0_i32_1 = arith.constant 0 : i32
    %5 = vector.broadcast %c0_i32_1 : i32 to vector<16x128xi32>
    %6 = arith.cmpi eq, %4, %5 : vector<16x128xi32>
    %c0_i32_2 = arith.constant 0 : i32
    %7 = vector.broadcast %c0_i32_2 : i32 to vector<16x128xi32>
    %8 = arith.cmpi eq, %3, %7 : vector<16x128xi32>
    %c0 = arith.constant 0 : index
    %c0_3 = arith.constant 0 : index
    %c0_4 = arith.constant 0 : index
    %9 = vector.load %arg2[%c0, %c0_3, %c0_4] : memref<1x16x128xf32, #tpu.memory_space<vmem>>, vector<1x16x128xf32>
    %10 = vector.shape_cast %9 : vector<1x16x128xf32> to vector<16x128xf32>
    %c0_5 = arith.constant 0 : index
    %c0_6 = arith.constant 0 : index
    %c0_7 = arith.constant 0 : index
    %c0_8 = arith.constant 0 : index
    %11 = vector.load %arg3[%c0_5, %c0_6, %c0_7, %c0_8] : memref<1x3x16x128xf32, #tpu.memory_space<vmem>>, vector<1x1x16x128xf32>
    %12 = vector.shape_cast %11 : vector<1x1x16x128xf32> to vector<16x128xf32>
    %cst = arith.constant 2.990000e-01 : f32
    %13 = vector.broadcast %cst : f32 to vector<16x128xf32>
    %14 = arith.mulf %13, %12 : vector<16x128xf32>
    %c0_9 = arith.constant 0 : index
    %c1 = arith.constant 1 : index
    %c0_10 = arith.constant 0 : index
    %c0_11 = arith.constant 0 : index
    %15 = vector.load %arg3[%c0_9, %c1, %c0_10, %c0_11] : memref<1x3x16x128xf32, #tpu.memory_space<vmem>>, vector<1x1x16x128xf32>
    %16 = vector.shape_cast %15 : vector<1x1x16x128xf32> to vector<16x128xf32>
    %cst_12 = arith.constant 5.870000e-01 : f32
    %17 = vector.broadcast %cst_12 : f32 to vector<16x128xf32>
    %18 = arith.mulf %17, %16 : vector<16x128xf32>
    %19 = arith.addf %14, %18 : vector<16x128xf32>
    %c0_13 = arith.constant 0 : index
    %c2 = arith.constant 2 : index
    %c0_14 = arith.constant 0 : index
    %c0_15 = arith.constant 0 : index
    %20 = vector.load %arg3[%c0_13, %c2, %c0_14, %c0_15] : memref<1x3x16x128xf32, #tpu.memory_space<vmem>>, vector<1x1x16x128xf32>
    %21 = vector.shape_cast %20 : vector<1x1x16x128xf32> to vector<16x128xf32>
    %cst_16 = arith.constant 1.140000e-01 : f32
    %22 = vector.broadcast %cst_16 : f32 to vector<16x128xf32>
    %23 = arith.mulf %22, %21 : vector<16x128xf32>
    %24 = arith.addf %19, %23 : vector<16x128xf32>
    %c1_i32 = arith.constant 1 : i32
    %25 = tpu.dynamic_rotate %10 by %c1_i32 dim 1 : vector<16x128xf32>, i32 -> vector<16x128xf32>
    %cst_17 = arith.constant 0.000000e+00 : f32
    %26 = vector.broadcast %cst_17 : f32 to vector<16x128xf32>
    %27 = arith.select %6, %26, %25 : vector<16x128xi1>, vector<16x128xf32>
    %28 = arith.subf %10, %27 : vector<16x128xf32>
    %29 = math.absf %28 : vector<16x128xf32>
    %c1_i32_18 = arith.constant 1 : i32
    %30 = tpu.dynamic_rotate %24 by %c1_i32_18 dim 1 : vector<16x128xf32>, i32 -> vector<16x128xf32>
    %cst_19 = arith.constant 0.000000e+00 : f32
    %31 = vector.broadcast %cst_19 : f32 to vector<16x128xf32>
    %32 = arith.select %6, %31, %30 : vector<16x128xi1>, vector<16x128xf32>
    %33 = arith.subf %24, %32 : vector<16x128xf32>
    %34 = math.absf %33 : vector<16x128xf32>
    %cst_20 = arith.constant 0.00999999977 : f32
    %35 = vector.broadcast %cst_20 : f32 to vector<16x128xf32>
    %36 = arith.maximumf %34, %35 : vector<16x128xf32>
    %37 = tpu.reciprocal %36 {approx = true} : vector<16x128xf32> -> vector<16x128xf32>
    %38 = arith.mulf %36, %37 : vector<16x128xf32>
    %cst_21 = arith.constant 2.000000e+00 : f32
    %39 = vector.broadcast %cst_21 : f32 to vector<16x128xf32>
    %40 = arith.subf %39, %38 : vector<16x128xf32>
    %41 = arith.mulf %37, %40 : vector<16x128xf32>
    %42 = arith.mulf %29, %41 : vector<16x128xf32>
    %c0_22 = arith.constant 0 : index
    %c0_23 = arith.constant 0 : index
    %43 = vector.load %arg5[%c0_22, %c0_23] : memref<1x128xf32, #tpu.memory_space<vmem>>, vector<1x128xf32>
    %c1_i32_24 = arith.constant 1 : i32
    %44 = tpu.dynamic_rotate %10 by %c1_i32_24 dim 0 : vector<16x128xf32>, i32 -> vector<16x128xf32>
    %45 = vector.shape_cast %43 : vector<1x128xf32> to vector<1x128xf32>
    %46 = vector.broadcast %45 : vector<1x128xf32> to vector<16x128xf32>
    %47 = arith.select %8, %46, %44 : vector<16x128xi1>, vector<16x128xf32>
    %48 = arith.subf %10, %47 : vector<16x128xf32>
    %49 = math.absf %48 : vector<16x128xf32>
    %c0_25 = arith.constant 0 : index
    %c0_26 = arith.constant 0 : index
    %50 = vector.load %arg6[%c0_25, %c0_26] : memref<1x128xf32, #tpu.memory_space<vmem>>, vector<1x128xf32>
    %c1_i32_27 = arith.constant 1 : i32
    %51 = tpu.dynamic_rotate %24 by %c1_i32_27 dim 0 : vector<16x128xf32>, i32 -> vector<16x128xf32>
    %52 = vector.shape_cast %50 : vector<1x128xf32> to vector<1x128xf32>
    %53 = vector.broadcast %52 : vector<1x128xf32> to vector<16x128xf32>
    %54 = arith.select %8, %53, %51 : vector<16x128xi1>, vector<16x128xf32>
    %55 = arith.subf %24, %54 : vector<16x128xf32>
    %56 = math.absf %55 : vector<16x128xf32>
    %cst_28 = arith.constant 0.00999999977 : f32
    %57 = vector.broadcast %cst_28 : f32 to vector<16x128xf32>
    %58 = arith.maximumf %56, %57 : vector<16x128xf32>
    %59 = tpu.reciprocal %58 {approx = true} : vector<16x128xf32> -> vector<16x128xf32>
    %60 = arith.mulf %58, %59 : vector<16x128xf32>
    %cst_29 = arith.constant 2.000000e+00 : f32
    %61 = vector.broadcast %cst_29 : f32 to vector<16x128xf32>
    %62 = arith.subf %61, %60 : vector<16x128xf32>
    %63 = arith.mulf %59, %62 : vector<16x128xf32>
    %64 = arith.mulf %49, %63 : vector<16x128xf32>
    %65 = arith.addf %42, %64 : vector<16x128xf32>
    %66 = vector.extract_strided_slice %10 {offsets = [15, 0], sizes = [1, 128], strides = [1, 1]} : vector<16x128xf32> to vector<1x128xf32>
    %c0_30 = arith.constant 0 : index
    %c0_31 = arith.constant 0 : index
    %67 = vector.load %arg5[%c0_30, %c0_31] : memref<1x128xf32, #tpu.memory_space<vmem>>, vector<1x128xf32>
    tpu.vector_store %arg5[%c0_30, %c0_31], %66 {strides = array<i32>} : memref<1x128xf32, #tpu.memory_space<vmem>>, vector<1x128xf32>,
    %68 = vector.extract_strided_slice %24 {offsets = [15, 0], sizes = [1, 128], strides = [1, 1]} : vector<16x128xf32> to vector<1x128xf32>
    %c0_32 = arith.constant 0 : index
    %c0_33 = arith.constant 0 : index
    %69 = vector.load %arg6[%c0_32, %c0_33] : memref<1x128xf32, #tpu.memory_space<vmem>>, vector<1x128xf32>
    tpu.vector_store %arg6[%c0_32, %c0_33], %68 {strides = array<i32>} : memref<1x128xf32, #tpu.memory_space<vmem>>, vector<1x128xf32>,
    %70 = vector.extract_strided_slice %65 {offsets = [0, 0], sizes = [8, 128], strides = [1, 1]} : vector<16x128xf32> to vector<8x128xf32>
    %71 = vector.extract_strided_slice %65 {offsets = [8, 0], sizes = [8, 128], strides = [1, 1]} : vector<16x128xf32> to vector<8x128xf32>
    %72 = arith.addf %70, %71 : vector<8x128xf32>
    %c0_34 = arith.constant 0 : index
    %c0_35 = arith.constant 0 : index
    %c0_36 = arith.constant 0 : index
    %73 = vector.load %arg4[%c0_34, %c0_35, %c0_36] : memref<1x8x128xf32, #tpu.memory_space<vmem>>, vector<1x8x128xf32>
    %74 = vector.shape_cast %72 : vector<8x128xf32> to vector<1x8x128xf32>
    %75 = arith.addf %73, %74 : vector<1x8x128xf32>
    %c0_37 = arith.constant 0 : index
    %c0_38 = arith.constant 0 : index
    %c0_39 = arith.constant 0 : index
    %76 = vector.load %arg4[%c0_37, %c0_38, %c0_39] : memref<1x8x128xf32, #tpu.memory_space<vmem>>, vector<1x8x128xf32>
    tpu.vector_store %arg4[%c0_37, %c0_38, %c0_39], %75 {strides = array<i32>} : memref<1x8x128xf32, #tpu.memory_space<vmem>>, vector<1x8x128xf32>,
    return
  }
  func.func @transform_0(%arg0: i32, %arg1: i32) -> (i32, i32, i32) {
    %c0_i32 = arith.constant 0 : i32
    %c0_i32_0 = arith.constant 0 : i32
    return %arg0, %arg1, %c0_i32 : i32, i32, i32
  }
  func.func @transform_1(%arg0: i32, %arg1: i32) -> (i32, i32, i32, i32) {
    %c0_i32 = arith.constant 0 : i32
    %c0_i32_0 = arith.constant 0 : i32
    %c0_i32_1 = arith.constant 0 : i32
    return %arg0, %c0_i32, %arg1, %c0_i32_0 : i32, i32, i32, i32
  }
  func.func @transform_2(%arg0: i32, %arg1: i32) -> (i32, i32, i32) {
    %c0_i32 = arith.constant 0 : i32
    %c0_i32_0 = arith.constant 0 : i32
    %c0_i32_1 = arith.constant 0 : i32
    return %arg0, %c0_i32, %c0_i32_0 : i32, i32, i32
  }
}

</mosaic_0001>

<bundles_post_ra>
// kernel: is_loss.1
= control target key start
LH: loop header
LB: loop body
LE: loop exit
PB: predicated region body
PF: predicated region fallthrough
CT: control target
= control target key end

     0   :  { %s507_s9 = smov 0   ;;  %s509_s10 = smov 0   ;;  %s569_s0 = inlined_call_operand.vmem [shape: f32[2,16,128], index: 0, kind: input, shape index: {}]   ;;  %s570_s1 = inlined_call_operand.vmem [shape: f32[2,3,16,128], index: 1, kind: input, shape index: {}]   ;;  %s571_s2 = inlined_call_operand.vmem [shape: f32[2,8,128], index: 2, kind: output, shape index: {}]  }
   0x1   :  { %s511_s11 = smov 0  }
   0x2 LB: > { %s24_s12 = sadd.s32 1, %s484_s10  ;;  %p417_p0 = scmp.ge.s32.totalorder %s488_s11, 1  ;;  %s488_s11 = sphi %s511_s11, %s12_s11   ;;  %s484_s10 = sphi %s509_s10, %s573_s10   ;;  %s480_s9 = sphi %s507_s9, %s572_s9  }
   0x3   : > { %p26_p1 = scmp.ge.s32.totalorder %s24_s12, 2  ;;  %p148_p2 = scmp.lt.s32.totalorder %s488_s11, 3 }
   0x5   : > { %s575_s12 = smov (%p26_p1, %s24_s12), 0  ;;  %p149_p3 = pnand %p417_p0, %p148_p2 }
   0x6   : > { %p183_p4 = scmp.lt.s32.totalorder (!%p149_p3), %s480_s9, 1  ;;  %s491_s21 = smov (!%p149_p3), 1  }
   0x7   : > { %152 = sbr.rel (%p149_p3) target bundleno = 176 (0xb0), region = 28 }
   0xc   : > { %v490_v0 = vmov 0.0   ;;  %s577_s9 = smov (!%p183_p4, %s480_s9), 1  ;;  %v213_v6 = vlaneseq }
   0xd   : > { %211 = vst [vmem:[#allocation2] sm:$0x1] %v490_v0  ;;  %212 = vst [vmem:[#allocation3] sm:$0x1] %v490_v0  ;;  %s431_s13 = smul.u32 48, %s577_s9  ;;  %s430_s14 = sshll.u32 %s577_s9, 4 }
   0xe   : > { %s190_s17 = scalar_lea.vmem %s569_s0, %s430_s14  ;;  %v214_v18 = vshrl.u32 %v213_v6, 7  ;;  %v217_v43 = vand.u32 127, %v213_v6  ;;  %s421_s22 = sshll.u32 %s577_s9, 3 }
   0xf   : > { %s200_s20 = scalar_lea.vmem %s570_s1, %s431_s13  ;;  %v535_v1 = vld [vmem:[%s190_s17] sm:$0xff]  ;;  %v537_v2 = vld [vmem:[%s190_s17 + $0x8] sm:$0xff]  ;;  %s205_s25 = scalar_lea.vmem %s571_s2, %s421_s22 }
  0x10   : > { %v223_v3 = vld [vmem:[%s200_s20] sm:$0xff]  ;;  %v422_v4 = vld [vmem:[%s200_s20 + $0x10] sm:$0xff]  ;;  %241 = vrot.lane.b32.xlu1 %v535_v1, %s491_s21  ;;  %v224_v10 = vld [vmem:[%s200_s20 + $0x8] sm:$0xff]  ;;  %vm276_vm0 = vcmp.lt.s32.totalorder %v214_v18, 1  ;;  %vm219_vm1 = vcmp.eq.s32.totalorder %v214_v18, 0  ;;  %v275_v30 = vrot.slane %v537_v2, 7 }
  0x11   : > { %v424_v5 = vld [vmem:[%s200_s20 + $0x20] sm:$0xff]  ;;  %v225_v7 = vmul.f32 0.299, %v223_v3  ;;  %v230_v8 = vmul.f32 0.587, %v422_v4  ;;  %v423_v11 = vld [vmem:[%s200_s20 + $0x18] sm:$0xff] }
  0x12   : > { %v237_v9 = vmul.f32 0.114, %v424_v5  ;;  %v425_v12 = vld [vmem:[%s200_s20 + $0x28] sm:$0xff]  ;;  %v226_v14 = vmul.f32 0.299, %v224_v10  ;;  %v274_v31 = vrot.slane %v535_v1, 7 }
  0x13   : > { %v232_v13 = vadd.f32 %v230_v8, %v225_v7  ;;  %v231_v15 = vmul.f32 0.587, %v423_v11  ;;  %v238_v16 = vmul.f32 0.114, %v425_v12  ;;  %vm218_vm2 = vcmp.eq.s32.totalorder %v217_v43, 0 }
  0x14   : > { %v426_v17 = vld [vmem:[#allocation2] ss:$0 sm:$0xff]  ;;  %243 = vrot.lane.b32.xlu1 %v537_v2, %s491_s21  ;;  %v427_v23 = vld [vmem:[#allocation3] ss:$0 sm:$0xff]  ;;  %v278_v32 = vsel %vm276_vm0, %v275_v30, %v274_v31  ;;  %v277_v60 = vsel %vm276_vm0, %v274_v31, %v275_v30 }
  0x15   : > { %v239_v19 = vadd.f32 %v237_v9, %v232_v13  ;;  %v233_v20 = vadd.f32 %v231_v15, %v226_v14  ;;  %322 = vst [vmem:[#allocation2 - $0x7] sm:$0x80] %v537_v2  ;;  %v285_v33 = vsel %vm219_vm1, %v426_v17, %v278_v32  ;;  %v288_v0 = vsub.f32 %v537_v2, %v277_v60 }
  0x16   : > { %v287_v34 = vsub.f32 %v535_v1, %v285_v33 }
  0x17   : > { %251 = vrot.lane.b32.xlu0 %v239_v19, %s491_s21  ;;  %v292_v21 = vrot.slane %v239_v19, 7  ;;  %v240_v22 = vadd.f32 %v238_v16, %v233_v20  ;;  %v290_v9 = vand.u32 2147483647, %v288_v0 }
  0x18   : > { %v289_v38 = vand.u32 2147483647, %v287_v34 }
  0x19   : > { %v293_v24 = vrot.slane %v240_v22, 7  ;;  %323 = vst [vmem:[#allocation3 - $0x7] sm:$0x80] %v240_v22 }
  0x1b   : > { %253 = vrot.lane.b32.xlu0 %v240_v22, %s491_s21  ;;  %v295_v25 = vsel %vm276_vm0, %v293_v24, %v292_v21  ;;  %v294_v41 = vsel %vm276_vm0, %v292_v21, %v293_v24 }
  0x1c   : > { %v302_v26 = vsel %vm219_vm1, %v427_v23, %v295_v25  ;;  %v305_v42 = vsub.f32 %v240_v22, %v294_v41 }
  0x1d   : > { %v304_v27 = vsub.f32 %v239_v19, %v302_v26 }
  0x1e   : > { %v307_v44 = vand.u32 2147483647, %v305_v42 }
  0x1f   : > { %v306_v28 = vand.u32 2147483647, %v304_v27 }
  0x20   : > { %v309_v45 = vmax.f32 %v307_v44, 0.01 }
  0x21   : > { %v308_v29 = vmax.f32 %v306_v28, 0.01 }
  0x23   : > { %458 = vrcp.f32 %v308_v29 }
  0x24   : > { %460 = vrcp.f32 %v309_v45 }
  0x30   : > { %v459_v35 = vpop.eup %458 }
  0x31   : > { %v312_v36 = vmul.f32 %v459_v35, %v308_v29  ;;  %v461_v57 = vpop.eup %460 }
  0x32   : > { %v313_v58 = vmul.f32 %v461_v57, %v309_v45 }
  0x33   : > { %v314_v37 = vsub.f32 2.0, %v312_v36 }
  0x34   : > { %v315_v5 = vsub.f32 2.0, %v313_v58 }
  0x35   : > { %v316_v39 = vmul.f32 %v459_v35, %v314_v37 }
  0x36   : > { %v317_v13 = vmul.f32 %v461_v57, %v315_v5 }
  0x37   : > { %v318_v40 = vmul.f32 %v316_v39, %v289_v38 }
  0x38   : > { %v319_v18 = vmul.f32 %v317_v13, %v290_v9 }
  0x82   : > { %v242_v56 = vpop.permute.xlu1 %241 }
  0x83   : > { %v245_v61 = vsel %vm218_vm2, 0.0, %v242_v56 }
  0x84   : > { %v247_v4 = vsub.f32 %v535_v1, %v245_v61 }
  0x86   : > { %v244_v59 = vpop.permute.xlu1 %243  ;;  %v249_v12 = vand.u32 2147483647, %v247_v4 }
  0x87   : > { %v246_v63 = vsel %vm218_vm2, 0.0, %v244_v59 }
  0x88   : > { %v248_v7 = vsub.f32 %v537_v2, %v246_v63 }
  0x89   : > { %v252_v46 = vpop.permute.xlu0 %251 }
  0x8a   : > { %v255_v47 = vsel %vm218_vm2, 0.0, %v252_v46  ;;  %v250_v15 = vand.u32 2147483647, %v248_v7 }
  0x8b   : > { %v257_v48 = vsub.f32 %v239_v19, %v255_v47 }
  0x8d   : > { %v259_v49 = vand.u32 2147483647, %v257_v48  ;;  %v254_v50 = vpop.permute.xlu0 %253 }
  0x8e   : > { %v256_v51 = vsel %vm218_vm2, 0.0, %v254_v50 }
  0x8f   : > { %v261_v52 = vmax.f32 %v259_v49, 0.01  ;;  %v258_v53 = vsub.f32 %v240_v22, %v256_v51 }
  0x91   : > { %462 = vrcp.f32 %v261_v52  ;;  %v260_v54 = vand.u32 2147483647, %v258_v53 }
  0x93   : > { %v262_v55 = vmax.f32 %v260_v54, 0.01 }
  0x95   : > { %464 = vrcp.f32 %v262_v55 }
  0x9e   : > { %v463_v62 = vpop.eup %462 }
  0x9f   : > { %v265_v3 = vmul.f32 %v463_v62, %v261_v52 }
  0xa1   : > { %v267_v6 = vsub.f32 2.0, %v265_v3 }
  0xa2   : > { %v465_v8 = vpop.eup %464 }
  0xa3   : > { %v266_v10 = vmul.f32 %v465_v8, %v262_v55  ;;  %v269_v11 = vmul.f32 %v463_v62, %v267_v6 }
  0xa5   : > { %v268_v14 = vsub.f32 2.0, %v266_v10  ;;  %v271_v16 = vmul.f32 %v269_v11, %v249_v12 }
  0xa7   : > { %v270_v17 = vmul.f32 %v465_v8, %v268_v14  ;;  %v320_v20 = vadd.f32 %v318_v40, %v271_v16 }
  0xa9   : > { %v272_v19 = vmul.f32 %v270_v17, %v250_v15 }
  0xab   : > { %v321_v1 = vadd.f32 %v319_v18, %v272_v19 }
  0xad   : > { %v324_v21 = vadd.f32 %v321_v1, %v320_v20 }
  0xaf   : > { %327 = vst [vmem:[%s205_s25] sm:$0xff] %v324_v21 }
  0xb0 PF: > { %s12_s11 = sadd.s32 1, %s488_s11   ;;  %s572_s9 = smov %s484_s10 }
  0xb1   : > { %p9_p5 = scmp.ge.s32.totalorder %s12_s11, 4   ;;  %s573_s10 = smov %s575_s12 }
  0xb3   :  { %11 = sbr.rel (!%p9_p5) target bundleno = 2 (0x2), region = 67 }

</bundles_post_ra>
